<compile_context>
chip_gen: v6e
topology: v6e:2x2x1
jax: 0.10.0
libtpu: 0.0.40
codegen_flags: <defaults>
</compile_context>

<pallas_src>
import math

import jax
import jax.numpy as jnp
from jax.experimental import pallas as pl
from jax.experimental.pallas import tpu as pltpu


def _round_up(x: int, m: int) -> int:
    return (x + m - 1) // m * m


def _cdiv(a: int, b: int) -> int:
    return (a + b - 1) // b


def _vmem_limit_bytes() -> int:
    """Generation-aware scoped-VMEM limit (v7x: 64 MiB/TC, v5e/v6e: 128 MiB)."""
    try:
        cap = int(pltpu.get_tpu_info().vmem_capacity_bytes)
    except Exception:
        cap = 64 * 1024 * 1024  # conservative (v7x-sized) fallback
    return min(96 * 1024 * 1024, (cap * 3) // 4)


def decoder_kernel(zt_ref, w1_ref, b1_ref, w2_ref, b2_ref, w3_ref, b3_ref, ot_ref):
    # All tensors are in (features, rows) layout: rows live on the lane axis.
    zt = zt_ref[...]                                                    # (latent_dim, TM), compute dtype
    cdt = zt.dtype
    h1 = jnp.dot(w1_ref[...], zt, preferred_element_type=jnp.float32)  # (nhidden, TM) f32
    h1 = jnp.tanh(h1 + b1_ref[...])                                     # f32 bias/tanh (v5e-safe)
    h2 = jnp.dot(w2_ref[...], h1.astype(cdt),
                 preferred_element_type=jnp.float32)                    # (nhidden//2, TM) f32
    h2 = jnp.tanh(h2 + b2_ref[...])
    out = jnp.dot(w3_ref[...], h2.astype(cdt),
                  preferred_element_type=jnp.float32) + b3_ref[...]     # (obs_dim, TM) f32
    ot_ref[...] = out.astype(ot_ref.dtype)


def decoder_forward(z, params, *, compute_dtype=jnp.bfloat16, tile_rows_max=65536):
    """z: (nbatch, nsamples, latent_dim) -> (nbatch, nsamples, obs_dim).

    params use PyTorch nn.Linear layout: W_i (out_features, in_features), b_i (out_features,).
    Matmul operands are computed in `compute_dtype` (f32 accumulation); pass
    compute_dtype=None to keep everything in the input dtype.
    """
    w1, b1, w2, b2, w3, b3 = params
    nbatch, nsamples, latent_dim = z.shape
    nhidden = w1.shape[0]
    nhalf = w2.shape[0]
    obs_dim = w3.shape[0]
    rows = nbatch * nsamples
    out_dtype = z.dtype
    cdt = jnp.dtype(compute_dtype if compute_dtype is not None else z.dtype)
    c_size = cdt.itemsize
    o_size = jnp.dtype(out_dtype).itemsize

    # ---- adaptive row tile --------------------------------------------------
    # Big tiles amortize the ~0.35us fixed cost per grid step; cap by VMEM
    # (double-buffered z^T/out tiles + f32 h1/h2/out temporaries + bf16 casts)
    # and keep >=2-4 tiles for large inputs so megacore sharding has work.
    vmem_limit = _vmem_limit_bytes()
    weight_bytes = (c_size * (nhidden * latent_dim + nhalf * nhidden + obs_dim * nhalf)
                    + 4 * (nhidden + nhalf + obs_dim))
    per_row_bytes = (2 * c_size * latent_dim            # double-buffered z^T tile
                     + 2 * o_size * obs_dim             # double-buffered out tile
                     + (4 + c_size) * (nhidden + nhalf) # f32 h1/h2 + casts
                     + 4 * obs_dim)                     # f32 out temporary
    tile_budget = max(1 << 20, int(vmem_limit * 0.6) - 2 * weight_bytes)
    tm_cap = max(128, min(tile_rows_max, tile_budget // per_row_bytes) // 128 * 128)

    if rows >= 4 * 128:
        min_tiles = 4
    elif rows >= 2 * 128:
        min_tiles = 2
    else:
        min_tiles = 1
    ntiles = max(min_tiles, _cdiv(rows, tm_cap))
    tm = min(tm_cap, _round_up(_cdiv(rows, ntiles), 128))
    rows_p = _round_up(rows, tm)

    # ---- prologue: rows -> lane axis (single fused transpose+cast) ----------
    zt = z.reshape(rows, latent_dim).T.astype(cdt)          # (latent_dim, rows)
    if rows_p != rows:
        zt = jnp.pad(zt, ((0, 0), (0, rows_p - rows)))      # small pad (adaptive tm)

    w1c = w1.astype(cdt)
    w2c = w2.astype(cdt)
    w3c = w3.astype(cdt)
    b1c = b1.astype(jnp.float32).reshape(nhidden, 1)
    b2c = b2.astype(jnp.float32).reshape(nhalf, 1)
    b3c = b3.astype(jnp.float32).reshape(obs_dim, 1)

    flops = 2 * rows_p * (latent_dim * nhidden + nhidden * nhalf + nhalf * obs_dim)
    bytes_accessed = (rows_p * (latent_dim * c_size + obs_dim * o_size) + weight_bytes)

    out_t = pl.pallas_call(
        decoder_kernel,
        out_shape=jax.ShapeDtypeStruct((obs_dim, rows_p), out_dtype),
        grid_spec=pl.GridSpec(
            grid=(rows_p // tm,),
            in_specs=[
                pl.BlockSpec((latent_dim, tm), lambda i: (0, i)),   # z^T row tile
                pl.BlockSpec(w1c.shape, lambda i: (0, 0)),          # weights/biases stay resident
                pl.BlockSpec(b1c.shape, lambda i: (0, 0)),
                pl.BlockSpec(w2c.shape, lambda i: (0, 0)),
                pl.BlockSpec(b2c.shape, lambda i: (0, 0)),
                pl.BlockSpec(w3c.shape, lambda i: (0, 0)),
                pl.BlockSpec(b3c.shape, lambda i: (0, 0)),
            ],
            out_specs=pl.BlockSpec((obs_dim, tm), lambda i: (0, i)),
        ),
        compiler_params=pltpu.CompilerParams(
            dimension_semantics=("parallel",),      # shard row tiles across TCs (v7x)
            vmem_limit_bytes=vmem_limit,
        ),
        cost_estimate=pl.CostEstimate(
            flops=flops,
            transcendentals=rows_p * (nhidden + nhalf),
            bytes_accessed=bytes_accessed,
        ),
    )(zt, w1c, b1c, w2c, b2c, w3c, b3c)

    # ---- epilogue: single fused slice + transpose + reshape ------------------
    return out_t[:, :rows].T.reshape(nbatch, nsamples, obs_dim)


def init_decoder_params(key, latent_dim, obs_dim, nhidden, dtype=jnp.float32):
    """PyTorch nn.Linear default init: U(-1/sqrt(fan_in), +1/sqrt(fan_in)).
    Weights stored PyTorch-style as (out_features, in_features), biases (out_features,)."""
    nhalf = int(nhidden / 2)
    dims = [(latent_dim, nhidden), (nhidden, nhalf), (nhalf, obs_dim)]
    params = []
    for fan_in, fan_out in dims:
        key, kw, kb = jax.random.split(key, 3)
        bound = 1.0 / math.sqrt(fan_in)
        w = jax.random.uniform(kw, (fan_out, fan_in), dtype, minval=-bound, maxval=bound)
        b = jax.random.uniform(kb, (fan_out,), dtype, minval=-bound, maxval=bound)
        params += [w, b]
    return tuple(params)


def decoder_reference(z, params):
    """Plain-JAX (f32) reference of the PyTorch forward pass."""
    w1, b1, w2, b2, w3, b3 = params
    out = jnp.tanh(z @ w1.T + b1)
    out = jnp.tanh(out @ w2.T + b2)
    return out @ w3.T + b3


if __name__ == "__main__":
    latent_dim, obs_dim, nhidden = 4, 3, 32
    nbatch, nsamples = 2, 8

    key = jax.random.PRNGKey(0)
    kz, kp = jax.random.split(key)
    z = jax.random.normal(kz, (nbatch, nsamples, latent_dim), dtype=jnp.float32)
    params = init_decoder_params(kp, latent_dim, obs_dim, nhidden)

    fwd = jax.jit(decoder_forward)
    out = fwd(z, params)
    out = jax.block_until_ready(out)

    ref = decoder_reference(z, params)
    assert out.shape == (nbatch, nsamples, obs_dim)
    # bf16 MXU operands with f32 accumulation -> loosened tolerance vs f32 reference.
    assert jnp.allclose(out, ref, atol=5e-2, rtol=5e-2), "mismatch vs reference"

    print("KERNEL_OK")
</pallas_src>

<mosaic_0001>
module attributes {stable_mosaic.version = 11 : i64} {
  func.func @decoder_kernel(%arg0: i32, %arg1: memref<4x128xbf16, #tpu.memory_space<vmem>>, %arg2: memref<32x4xbf16, #tpu.memory_space<vmem>>, %arg3: memref<32x1xf32, #tpu.memory_space<vmem>>, %arg4: memref<16x32xbf16, #tpu.memory_space<vmem>>, %arg5: memref<16x1xf32, #tpu.memory_space<vmem>>, %arg6: memref<3x16xbf16, #tpu.memory_space<vmem>>, %arg7: memref<3x1xf32, #tpu.memory_space<vmem>>, %arg8: memref<3x128xf32, #tpu.memory_space<vmem>>) attributes {dimension_semantics = [#tpu.dimension_semantics<parallel>], iteration_bounds = array<i64: 1>, scalar_prefetch = 0 : i64, scratch_operands = 0 : i64, tpu.core_type = #tpu.core_type<tc>, window_params = [{transform_indices = @transform_0, window_bounds = array<i64: 4, 128>}, {pipeline_mode = #tpu.pipeline_mode<synchronous>, transform_indices = @transform_1, window_bounds = array<i64: 32, 4>}, {pipeline_mode = #tpu.pipeline_mode<synchronous>, transform_indices = @transform_2, window_bounds = array<i64: 32, 1>}, {pipeline_mode = #tpu.pipeline_mode<synchronous>, transform_indices = @transform_3, window_bounds = array<i64: 16, 32>}, {pipeline_mode = #tpu.pipeline_mode<synchronous>, transform_indices = @transform_4, window_bounds = array<i64: 16, 1>}, {pipeline_mode = #tpu.pipeline_mode<synchronous>, transform_indices = @transform_5, window_bounds = array<i64: 3, 16>}, {pipeline_mode = #tpu.pipeline_mode<synchronous>, transform_indices = @transform_6, window_bounds = array<i64: 3, 1>}, {transform_indices = @transform_7, window_bounds = array<i64: 3, 128>}]} {
    %c0 = arith.constant 0 : index
    %c0_0 = arith.constant 0 : index
    %0 = vector.load %arg1[%c0, %c0_0] : memref<4x128xbf16, #tpu.memory_space<vmem>>, vector<4x128xbf16>
    %c0_1 = arith.constant 0 : index
    %c0_2 = arith.constant 0 : index
    %1 = vector.load %arg2[%c0_1, %c0_2] : memref<32x4xbf16, #tpu.memory_space<vmem>>, vector<32x4xbf16>
    %cst = arith.constant dense<0.000000e+00> : vector<32x128xf32>
    %2 = tpu.matmul %1, %0, %cst {dimension_numbers = #tpu.dot_dimension_numbers<[1], [0], [0], [1], [0, 0, 1, 1], [], []>} : vector<32x4xbf16>, vector<4x128xbf16>, vector<32x128xf32> -> vector<32x128xf32>
    %c0_3 = arith.constant 0 : index
    %c0_4 = arith.constant 0 : index
    %3 = vector.load %arg3[%c0_3, %c0_4] : memref<32x1xf32, #tpu.memory_space<vmem>>, vector<32x1xf32>
    %4 = vector.broadcast %3 : vector<32x1xf32> to vector<32x128xf32>
    %5 = arith.addf %2, %4 : vector<32x128xf32>
    %6 = math.tanh %5 : vector<32x128xf32>
    %c0_5 = arith.constant 0 : index
    %c0_6 = arith.constant 0 : index
    %7 = vector.load %arg4[%c0_5, %c0_6] : memref<16x32xbf16, #tpu.memory_space<vmem>>, vector<16x32xbf16>
    %8 = arith.truncf %6 : vector<32x128xf32> to vector<32x128xbf16>
    %cst_7 = arith.constant dense<0.000000e+00> : vector<16x128xf32>
    %9 = tpu.matmul %7, %8, %cst_7 {dimension_numbers = #tpu.dot_dimension_numbers<[1], [0], [0], [1], [0, 0, 1, 1], [], []>} : vector<16x32xbf16>, vector<32x128xbf16>, vector<16x128xf32> -> vector<16x128xf32>
    %c0_8 = arith.constant 0 : index
    %c0_9 = arith.constant 0 : index
    %10 = vector.load %arg5[%c0_8, %c0_9] : memref<16x1xf32, #tpu.memory_space<vmem>>, vector<16x1xf32>
    %11 = vector.broadcast %10 : vector<16x1xf32> to vector<16x128xf32>
    %12 = arith.addf %9, %11 : vector<16x128xf32>
    %13 = math.tanh %12 : vector<16x128xf32>
    %c0_10 = arith.constant 0 : index
    %c0_11 = arith.constant 0 : index
    %14 = vector.load %arg6[%c0_10, %c0_11] : memref<3x16xbf16, #tpu.memory_space<vmem>>, vector<3x16xbf16>
    %15 = arith.truncf %13 : vector<16x128xf32> to vector<16x128xbf16>
    %cst_12 = arith.constant dense<0.000000e+00> : vector<3x128xf32>
    %16 = tpu.matmul %14, %15, %cst_12 {dimension_numbers = #tpu.dot_dimension_numbers<[1], [0], [0], [1], [0, 0, 1, 1], [], []>} : vector<3x16xbf16>, vector<16x128xbf16>, vector<3x128xf32> -> vector<3x128xf32>
    %c0_13 = arith.constant 0 : index
    %c0_14 = arith.constant 0 : index
    %17 = vector.load %arg7[%c0_13, %c0_14] : memref<3x1xf32, #tpu.memory_space<vmem>>, vector<3x1xf32>
    %18 = vector.broadcast %17 : vector<3x1xf32> to vector<3x128xf32>
    %19 = arith.addf %16, %18 : vector<3x128xf32>
    %c0_15 = arith.constant 0 : index
    %c0_16 = arith.constant 0 : index
    %20 = vector.load %arg8[%c0_15, %c0_16] : memref<3x128xf32, #tpu.memory_space<vmem>>, vector<3x128xf32>
    tpu.vector_store %arg8[%c0_15, %c0_16], %19 {strides = array<i32>} : memref<3x128xf32, #tpu.memory_space<vmem>>, vector<3x128xf32>,
    return
  }
  func.func @transform_0(%arg0: i32) -> (i32, i32) {
    %c0_i32 = arith.constant 0 : i32
    %c0_i32_0 = arith.constant 0 : i32
    return %c0_i32, %arg0 : i32, i32
  }
  func.func @transform_1(%arg0: i32) -> (i32, i32) {
    %c0_i32 = arith.constant 0 : i32
    %c0_i32_0 = arith.constant 0 : i32
    %c0_i32_1 = arith.constant 0 : i32
    return %c0_i32, %c0_i32_0 : i32, i32
  }
  func.func @transform_2(%arg0: i32) -> (i32, i32) {
    %c0_i32 = arith.constant 0 : i32
    %c0_i32_0 = arith.constant 0 : i32
    %c0_i32_1 = arith.constant 0 : i32
    return %c0_i32, %c0_i32_0 : i32, i32
  }
  func.func @transform_3(%arg0: i32) -> (i32, i32) {
    %c0_i32 = arith.constant 0 : i32
    %c0_i32_0 = arith.constant 0 : i32
    %c0_i32_1 = arith.constant 0 : i32
    return %c0_i32, %c0_i32_0 : i32, i32
  }
  func.func @transform_4(%arg0: i32) -> (i32, i32) {
    %c0_i32 = arith.constant 0 : i32
    %c0_i32_0 = arith.constant 0 : i32
    %c0_i32_1 = arith.constant 0 : i32
    return %c0_i32, %c0_i32_0 : i32, i32
  }
  func.func @transform_5(%arg0: i32) -> (i32, i32) {
    %c0_i32 = arith.constant 0 : i32
    %c0_i32_0 = arith.constant 0 : i32
    %c0_i32_1 = arith.constant 0 : i32
    return %c0_i32, %c0_i32_0 : i32, i32
  }
  func.func @transform_6(%arg0: i32) -> (i32, i32) {
    %c0_i32 = arith.constant 0 : i32
    %c0_i32_0 = arith.constant 0 : i32
    %c0_i32_1 = arith.constant 0 : i32
    return %c0_i32, %c0_i32_0 : i32, i32
  }
  func.func @transform_7(%arg0: i32) -> (i32, i32) {
    %c0_i32 = arith.constant 0 : i32
    %c0_i32_0 = arith.constant 0 : i32
    return %c0_i32, %arg0 : i32, i32
  }
}

</mosaic_0001>

<bundles_post_ra>
// kernel: decoder_forward.1
= control target key start
LH: loop header
LB: loop body
LE: loop exit
PB: predicated region body
PF: predicated region fallthrough
CT: control target
= control target key end

     0   :  { %vm73_vm0 = vcmask 1041408   ;;  %vm66_vm1 = vcmask 31744   ;;  %v311_v1 = vmov 0   ;;  %v312_v12 = vmov 0.0   ;;  %s395_s0 = inlined_call_operand.vmem [shape: bf16[4,128], index: 0, kind: input, shape index: {}]   ;;  %s396_s1 = inlined_call_operand.vmem [shape: bf16[32,4], index: 1, kind: input, shape index: {}]   ;;  %s397_s2 = inlined_call_operand.vmem [shape: f32[32,1], index: 2, kind: input, shape index: {}]   ;;  %s398_s4 = inlined_call_operand.vmem [shape: f32[16,1], index: 4, kind: input, shape index: {}]   ;;  %s399_s6 = inlined_call_operand.vmem [shape: f32[3,1], index: 6, kind: input, shape index: {}]   ;;  %s400_s3 = inlined_call_operand.vmem [shape: bf16[16,32], index: 3, kind: input, shape index: {}]   ;;  %s401_s5 = inlined_call_operand.vmem [shape: bf16[3,16], index: 5, kind: input, shape index: {}]   ;;  %s402_s7 = inlined_call_operand.vmem [shape: f32[3,128], index: 7, kind: output, shape index: {}]  }
   0x1   :  { %v27_v0 = vld [vmem:[%s395_s0] sm:$0x3]  ;;  %294 = vset.pattern.permute.xlu0 %v311_v1  ;;  %295 = vset.pattern.permute.xlu1 %v311_v1  ;;  %v297_v4 = vld [vmem:[%s396_s1 + $0x8] sm:$0xff]   ;;  %v34_v5 = vld [vmem:[%s397_s2 + $0x10] sm:$0xff]  ;;  %vm313_vm2 = vmmov 0   ;;  %vm151_vm3 = vcmask 261120  }
   0x2   :  { %290 = vmatprep.subr.msk.bf16.mxu0 %vm73_vm0, %v27_v0  ;;  %v75_v2 = vsel %vm73_vm0, %v27_v0, 0  ;;  %v296_v3 = vld [vmem:[%s396_s1] sm:$0xff]   ;;  %48 = vperm.xlu0 %294, %v34_v5   ;;  %v35_v7 = vld [vmem:[%s397_s2 + $0x18] sm:$0xff]  ;;  %v33_v8 = vld [vmem:[%s397_s2 + $0x8] sm:$0xff]  ;;  %vm206_vm4 = vcmask 130048  }
   0x3   :  { %271 = vmatpush3.bf16.msra.mxu0 %v75_v2  ;;  %272 = vmatprep.mubr.msk.bf16.mxu0 %vm66_vm1, %v296_v3  ;;  %v32_v6 = vld [vmem:[%s397_s2] sm:$0xff]  ;;  %v135_v10 = vld [vmem:[%s398_s4 + $0x8] sm:$0xff] }
   0x4   :  { %38 = vperm.xlu1 %295, %v32_v6   ;;  %v134_v9 = vld [vmem:[%s398_s4] sm:$0xff]  ;;  %276 = vmatprep.subr.bf16.mxu1 %v312_v12 }
   0x5   :  { %v200_v11 = vld [vmem:[%s399_s6] sm:$0x7]  ;;  %284 = vmatprep.subr.bf16.mxu0 %v312_v12  ;;  %280 = vmatprep.mubr.msk.bf16.mxu1 %vm313_vm2, %v312_v12 }
   0x6   :  { %273 = vmatmul.mubr.msk.bf16.vlgmr.msra.gmra.mxu0 %vm66_vm1, %v297_v4  ;;  %53 = vperm.xlu0 %294, %v35_v7   ;;  %v298_v31 = vld [vmem:[%s400_s3] sm:$0xff]  }
   0x7   :  { %286 = vmatprep.mubr.msk.bf16.mxu0 %vm313_vm2, %v312_v12  ;;  %v198_v43 = vld [vmem:[%s401_s5] sm:$0x3] }
   0x8   :  { %43 = vperm.xlu1 %295, %v33_v8  }
   0xa   :  { %138 = vperm.xlu0 %294, %v134_v9  }
   0xc   :  { %143 = vperm.xlu1 %295, %v135_v10  }
   0xe   :  { %203 = vperm.xlu0 %294, %v200_v11  }
  0x7d   :  { %v49_v13 = vpop.permute.xlu0 %48 }
  0x7f   :  { %v39_v14 = vpop.permute.xlu1 %38 }
  0x81   :  { %v54_v18 = vpop.permute.xlu0 %53 }
  0x83   :  { %v44_v21 = vpop.permute.xlu1 %43 }
  0x85   :  { %v139_v33 = vpop.permute.xlu0 %138 }
  0x87   :  { %v144_v36 = vpop.permute.xlu1 %143 }
  0x89   :  { %v204_v44 = vpop.permute.xlu0 %203 }
  0xc6   :  { %v274_v15 = vpop.f32.mrf.mxu0 }
  0xc7   :  { %v120_v16 = vadd.f32 %v274_v15, %v49_v13 }
  0xc8   :  { %v111_v17 = vpop.f32.mrf.mxu0 }
  0xc9   :  { %299 = vtanh.f32 %v120_v16  ;;  %v112_v23 = vadd.f32 %v111_v17, %v39_v14 }
  0xca   :  { %v275_v19 = vpop.f32.mrf.mxu0 }
  0xcb   :  { %v123_v20 = vadd.f32 %v275_v19, %v54_v18 }
  0xcc   :  { %v114_v22 = vpop.f32.mrf.mxu0 }
  0xcd   :  { %301 = vtanh.f32 %v123_v20  ;;  %v115_v24 = vadd.f32 %v114_v22, %v44_v21 }
  0xcf   :  { %303 = vtanh.f32 %v115_v24 }
  0xd0   :  { %305 = vtanh.f32 %v112_v23 }
  0xd6   :  { %v300_v25 = vpop.eup %299 }
  0xda   :  { %v302_v26 = vpop.eup %301 }
  0xdb   :  { %v133_v27 = vpack.c.bf16 %v302_v26, %v300_v25 }
  0xdc   :  { %v304_v28 = vpop.eup %303 }
  0xdd   :  { %277 = vmatpush3.bf16.msra.mxu1 %v133_v27  ;;  %v306_v29 = vpop.eup %305 }
  0xde   :  { %278 = vmatprep.subr.bf16.mxu1 %v312_v12  ;;  %v132_v30 = vpack.c.bf16 %v304_v28, %v306_v29 }
  0xe1   :  { %279 = vmatpush3.bf16.msra.mxu1 %v132_v30 }
  0xe4   :  { %281 = vmatmul.mubr.msk.bf16.vlgmr.msra.gmra.mxu1 %vm151_vm3, %v298_v31 }
 0x1a4   :  { %v189_v32 = vpop.f32.mrf.mxu1 }
 0x1a5   :  { %v190_v34 = vadd.f32 %v189_v32, %v139_v33 }
 0x1a6   :  { %v282_v35 = vpop.f32.mrf.mxu1 }
 0x1a7   :  { %307 = vtanh.f32 %v190_v34 }
 0x1a8   :  { %v192_v37 = vpop.f32.mrf.mxu1 }
 0x1a9   :  { %v193_v38 = vadd.f32 %v192_v37, %v144_v36 }
 0x1aa   :  { %v283_v39 = vpop.f32.mrf.mxu1 }
 0x1ab   :  { %309 = vtanh.f32 %v193_v38 }
 0x1b4   :  { %v308_v40 = vpop.eup %307 }
 0x1b8   :  { %v310_v41 = vpop.eup %309 }
 0x1b9   :  { %v199_v42 = vpack.c.bf16 %v310_v41, %v308_v40 }
 0x1bb   :  { %285 = vmatpush3.bf16.msra.mxu0 %v199_v42 }
 0x1be   :  { %287 = vmatmul.mubr.msk.bf16.vlgmr.msra.gmra.mxu0 %vm206_vm4, %v198_v43 }
 0x27e   :  { %v244_v45 = vpop.f32.mrf.mxu0 }
 0x27f   :  { %v245_v46 = vadd.f32 %v244_v45, %v204_v44 }
 0x280   :  { %v288_v47 = vpop.f32.mrf.mxu0 }
 0x281   :  { %250 = vst [vmem:[%s402_s7] sm:$0x7] %v245_v46 }
 0x282   :  { %v247_v48 = vpop.f32.mrf.mxu0 }
 0x284   :  { %v289_v49 = vpop.f32.mrf.mxu0 }

</bundles_post_ra>
